<compile_context>
chip_gen: v5e
topology: v5e:2x2
jax: 0.10.0
libtpu: 0.0.40
codegen_flags: <defaults>
</compile_context>

<pallas_src>
import jax
import jax.numpy as jnp
from jax.experimental import pallas as pl
from jax.experimental.pallas import tpu as pltpu

EPS = 1e-5  # torch.nn.BatchNorm1d default eps


def _pretrained_features_kernel(idx_ref, feats_ref, w_ref, b_ref, g_ref,
                                beta_ref, o_ref):
    # idx_ref:   (K*B, 1) int32  K-major flattened index (row = k*B + b)
    # feats_ref: (N, F)          whole pretrained feature table (resident in VMEM)
    # w_ref:     (F, E)          fc weight, pre-transposed to MXU-canonical layout
    # b_ref, g_ref, beta_ref: (1, E)   fc bias, bn gamma, bn beta
    # o_ref:     (B, K*E)        lane-dense output slab; cols k*E:(k+1)*E = slice k
    B = o_ref.shape[0]
    N = feats_ref.shape[0]
    E = w_ref.shape[1]
    KB = idx_ref.shape[0]
    K = KB // B

    # ---- Fused gather: one-hot (K*B, N) @ (N, F) on the MXU (exact, 0/1 rows).
    cols = jax.lax.broadcasted_iota(jnp.int32, (KB, N), 1)
    onehot = (idx_ref[...] == cols).astype(feats_ref.dtype)          # (K*B, N)
    x = jax.lax.dot_general(
        onehot, feats_ref[...],
        dimension_numbers=(((1,), (0,)), ((), ())),
        preferred_element_type=jnp.float32)                          # (K*B, F)

    # Hoisted once (no per-k re-broadcast of the (1, E) vectors).
    bias = b_ref[...]
    gamma = g_ref[...]
    beta = beta_ref[...]

    # ---- One MXU projection for all K slices, canonical contraction, f32 acc.
    y = jax.lax.dot_general(
        x.astype(w_ref.dtype), w_ref[...],
        dimension_numbers=(((1,), (0,)), ((), ())),
        preferred_element_type=jnp.float32)                          # (K*B, E)
    y = jnp.maximum(y + bias, 0.0)                                   # bias + ReLU

    # ---- Per-slice BatchNorm1d (training mode: biased batch stats over B).
    # K is small & static; tiles are concatenated so the epilogue is ONE
    # unmasked lane-dense (B, K*E) store instead of K masked E-lane stores.
    # TODO(synk): for K >> 4, reshape to (K, B, E) + two batched reductions (or
    # lax.fori_loop over a VMEM scratch) instead of static Python unrolling.
    tiles = []
    for k in range(K):
        yk = y[k * B:(k + 1) * B, :]                                 # (B, E)
        mean = jnp.mean(yk, axis=0, keepdims=True)                   # (1, E)
        # Guarded one-pass variance (clamp kills cancellation-induced negatives).
        var = jnp.maximum(
            jnp.mean(yk * yk, axis=0, keepdims=True) - mean * mean, 0.0)
        scale = gamma * jax.lax.rsqrt(var + EPS)                     # (1, E)
        shift = beta - mean * scale                                  # (1, E)
        tiles.append(yk * scale + shift)                             # 2 VPU ops/elem
    o_ref[...] = jnp.concatenate(tiles, axis=1).astype(o_ref.dtype)  # (B, K*E)


def pretrained_features_forward(index, feats, w, b, gamma, beta, dropout_prob=0.0):
    """index: (B, K) int; feats: (N, F); w: (E, F) torch layout; b/gamma/beta: (E,)."""
    # TODO(synk): dropout_prob > 0 would need pltpu.prng_* masks; p=0.0 is identity.
    assert dropout_prob == 0.0
    # TODO(synk): BatchNorm running_mean/var momentum updates are stateful and not
    # part of the forward output, so they are not emulated here.
    B, K = index.shape
    N, F = feats.shape
    E = w.shape[0]

    # Only the tiny (B, K) index is reshaped (K-major); the feature tensor is
    # never materialized in HBM outside the kernel.
    flat_idx = jnp.transpose(index).reshape(K * B, 1).astype(jnp.int32)
    # One trace-time transpose so the in-kernel contraction is MXU-canonical.
    w_fe = jnp.transpose(w)                                          # (F, E)

    vmem = pl.BlockSpec(memory_space=pltpu.MemorySpace.VMEM)
    # Grid-less single call is the fast path at B*K = 32.  At production sizes:
    # add a K-"parallel" grid (x BlockSpec (B,F) -> (k,0), out (B,E) -> (0,k),
    # weights resident), cast x/w to bf16 for the matmul, pad E to 128 lanes,
    # and set pltpu.CompilerParams(vmem_limit_bytes=...) for v7x's 64 MiB VMEM.
    out_slab = pl.pallas_call(
        _pretrained_features_kernel,
        out_shape=jax.ShapeDtypeStruct((B, K * E), feats.dtype),
        in_specs=[vmem] * 6,
        out_specs=vmem,
    )(flat_idx, feats, w_fe,
      b.reshape(1, E), gamma.reshape(1, E), beta.reshape(1, E))

    return out_slab.reshape(B, K, E)                                 # free contiguous split


def _reference_forward(index, feats, w, b, gamma, beta):
    x = feats[index]                                                 # (B, K, F)
    y = jnp.einsum("bkf,ef->bke", x, w) + b
    y = jnp.maximum(y, 0.0)
    mean = jnp.mean(y, axis=0, keepdims=True)                        # per (k, e) over batch
    var = jnp.mean((y - mean) ** 2, axis=0, keepdims=True)
    return (y - mean) / jnp.sqrt(var + EPS) * gamma + beta


if __name__ == "__main__":
    key = jax.random.PRNGKey(0)
    k_feat, k_w, k_b, k_g, k_beta, k_idx = jax.random.split(key, 6)

    N, F, E = 10, 64, 32        # pretrained rows, pretrained feat dim, embed_size
    B, K = 8, 4                 # batch, items per example

    pretrained_feats = jax.random.normal(k_feat, (N, F), dtype=jnp.float32)
    fc_w = jax.random.normal(k_w, (E, F), dtype=jnp.float32) * 0.1   # torch Linear layout
    fc_b = jax.random.normal(k_b, (E,), dtype=jnp.float32) * 0.1
    bn_gamma = 1.0 + 0.1 * jax.random.normal(k_g, (E,), dtype=jnp.float32)
    bn_beta = 0.1 * jax.random.normal(k_beta, (E,), dtype=jnp.float32)
    index = jax.random.randint(k_idx, (B, K), 0, N, dtype=jnp.int32)

    out = pretrained_features_forward(index, pretrained_feats, fc_w, fc_b,
                                      bn_gamma, bn_beta, dropout_prob=0.0)
    out = jax.block_until_ready(out)

    ref = _reference_forward(index, pretrained_feats, fc_w, fc_b, bn_gamma, bn_beta)
    assert out.shape == (B, K, E)
    assert jnp.allclose(out, ref, atol=2e-4, rtol=2e-4), \
        float(jnp.max(jnp.abs(out - ref)))
    print("KERNEL_OK")
</pallas_src>

<mosaic_0001>
module attributes {stable_mosaic.version = 11 : i64} {
  func.func @_pretrained_features_kernel(%arg0: memref<32x1xi32, #tpu.memory_space<vmem>>, %arg1: memref<10x64xf32, #tpu.memory_space<vmem>>, %arg2: memref<64x32xf32, #tpu.memory_space<vmem>>, %arg3: memref<1x32xf32, #tpu.memory_space<vmem>>, %arg4: memref<1x32xf32, #tpu.memory_space<vmem>>, %arg5: memref<1x32xf32, #tpu.memory_space<vmem>>, %arg6: memref<8x128xf32, #tpu.memory_space<vmem>>) attributes {dimension_semantics = [], scalar_prefetch = 0 : i64, scratch_operands = 0 : i64, tpu.core_type = #tpu.core_type<tc>} {
    %0 = tpu.iota {dimensions = array<i32: 1>} : vector<32x10xi32>
    %c0 = arith.constant 0 : index
    %c0_0 = arith.constant 0 : index
    %1 = vector.load %arg0[%c0, %c0_0] : memref<32x1xi32, #tpu.memory_space<vmem>>, vector<32x1xi32>
    %2 = vector.broadcast %1 : vector<32x1xi32> to vector<32x10xi32>
    %3 = arith.cmpi eq, %2, %0 : vector<32x10xi32>
    %4 = arith.extui %3 : vector<32x10xi1> to vector<32x10xi32>
    %5 = arith.sitofp %4 : vector<32x10xi32> to vector<32x10xf32>
    %c0_1 = arith.constant 0 : index
    %c0_2 = arith.constant 0 : index
    %6 = vector.load %arg1[%c0_1, %c0_2] : memref<10x64xf32, #tpu.memory_space<vmem>>, vector<10x64xf32>
    %cst = arith.constant dense<0.000000e+00> : vector<32x64xf32>
    %7 = tpu.matmul %5, %6, %cst {dimension_numbers = #tpu.dot_dimension_numbers<[1], [0], [0], [1], [0, 0, 1, 1], [], []>} : vector<32x10xf32>, vector<10x64xf32>, vector<32x64xf32> -> vector<32x64xf32>
    %c0_3 = arith.constant 0 : index
    %c0_4 = arith.constant 0 : index
    %8 = vector.load %arg3[%c0_3, %c0_4] : memref<1x32xf32, #tpu.memory_space<vmem>>, vector<1x32xf32>
    %c0_5 = arith.constant 0 : index
    %c0_6 = arith.constant 0 : index
    %9 = vector.load %arg4[%c0_5, %c0_6] : memref<1x32xf32, #tpu.memory_space<vmem>>, vector<1x32xf32>
    %c0_7 = arith.constant 0 : index
    %c0_8 = arith.constant 0 : index
    %10 = vector.load %arg5[%c0_7, %c0_8] : memref<1x32xf32, #tpu.memory_space<vmem>>, vector<1x32xf32>
    %c0_9 = arith.constant 0 : index
    %c0_10 = arith.constant 0 : index
    %11 = vector.load %arg2[%c0_9, %c0_10] : memref<64x32xf32, #tpu.memory_space<vmem>>, vector<64x32xf32>
    %cst_11 = arith.constant dense<0.000000e+00> : vector<32x32xf32>
    %12 = tpu.matmul %7, %11, %cst_11 {dimension_numbers = #tpu.dot_dimension_numbers<[1], [0], [0], [1], [0, 0, 1, 1], [], []>} : vector<32x64xf32>, vector<64x32xf32>, vector<32x32xf32> -> vector<32x32xf32>
    %13 = vector.broadcast %8 : vector<1x32xf32> to vector<32x32xf32>
    %14 = arith.addf %12, %13 : vector<32x32xf32>
    %cst_12 = arith.constant 0.000000e+00 : f32
    %15 = vector.broadcast %cst_12 : f32 to vector<32x32xf32>
    %16 = arith.maximumf %14, %15 : vector<32x32xf32>
    %17 = vector.extract_strided_slice %16 {offsets = [0, 0], sizes = [8, 32], strides = [1, 1]} : vector<32x32xf32> to vector<8x32xf32>
    %cst_13 = arith.constant dense<0.000000e+00> : vector<32xf32>
    %18 = vector.multi_reduction <add>, %17, %cst_13 [0] : vector<8x32xf32> to vector<32xf32>
    %19 = vector.shape_cast %18 : vector<32xf32> to vector<1x32xf32>
    %cst_14 = arith.constant 8.000000e+00 : f32
    %20 = vector.broadcast %cst_14 : f32 to vector<1x32xf32>
    %21 = arith.divf %19, %20 : vector<1x32xf32>
    %22 = arith.mulf %17, %17 : vector<8x32xf32>
    %cst_15 = arith.constant dense<0.000000e+00> : vector<32xf32>
    %23 = vector.multi_reduction <add>, %22, %cst_15 [0] : vector<8x32xf32> to vector<32xf32>
    %24 = vector.shape_cast %23 : vector<32xf32> to vector<1x32xf32>
    %cst_16 = arith.constant 8.000000e+00 : f32
    %25 = vector.broadcast %cst_16 : f32 to vector<1x32xf32>
    %26 = arith.divf %24, %25 : vector<1x32xf32>
    %27 = arith.mulf %21, %21 : vector<1x32xf32>
    %28 = arith.subf %26, %27 : vector<1x32xf32>
    %cst_17 = arith.constant 0.000000e+00 : f32
    %29 = vector.broadcast %cst_17 : f32 to vector<1x32xf32>
    %30 = arith.maximumf %28, %29 : vector<1x32xf32>
    %cst_18 = arith.constant 9.99999974E-6 : f32
    %31 = vector.broadcast %cst_18 : f32 to vector<1x32xf32>
    %32 = arith.addf %30, %31 : vector<1x32xf32>
    %33 = math.rsqrt %32 : vector<1x32xf32>
    %34 = arith.mulf %9, %33 : vector<1x32xf32>
    %35 = arith.mulf %21, %34 : vector<1x32xf32>
    %36 = arith.subf %10, %35 : vector<1x32xf32>
    %37 = vector.broadcast %34 : vector<1x32xf32> to vector<8x32xf32>
    %38 = arith.mulf %17, %37 : vector<8x32xf32>
    %39 = vector.broadcast %36 : vector<1x32xf32> to vector<8x32xf32>
    %40 = arith.addf %38, %39 : vector<8x32xf32>
    %41 = vector.extract_strided_slice %16 {offsets = [8, 0], sizes = [8, 32], strides = [1, 1]} : vector<32x32xf32> to vector<8x32xf32>
    %cst_19 = arith.constant dense<0.000000e+00> : vector<32xf32>
    %42 = vector.multi_reduction <add>, %41, %cst_19 [0] : vector<8x32xf32> to vector<32xf32>
    %43 = vector.shape_cast %42 : vector<32xf32> to vector<1x32xf32>
    %cst_20 = arith.constant 8.000000e+00 : f32
    %44 = vector.broadcast %cst_20 : f32 to vector<1x32xf32>
    %45 = arith.divf %43, %44 : vector<1x32xf32>
    %46 = arith.mulf %41, %41 : vector<8x32xf32>
    %cst_21 = arith.constant dense<0.000000e+00> : vector<32xf32>
    %47 = vector.multi_reduction <add>, %46, %cst_21 [0] : vector<8x32xf32> to vector<32xf32>
    %48 = vector.shape_cast %47 : vector<32xf32> to vector<1x32xf32>
    %cst_22 = arith.constant 8.000000e+00 : f32
    %49 = vector.broadcast %cst_22 : f32 to vector<1x32xf32>
    %50 = arith.divf %48, %49 : vector<1x32xf32>
    %51 = arith.mulf %45, %45 : vector<1x32xf32>
    %52 = arith.subf %50, %51 : vector<1x32xf32>
    %cst_23 = arith.constant 0.000000e+00 : f32
    %53 = vector.broadcast %cst_23 : f32 to vector<1x32xf32>
    %54 = arith.maximumf %52, %53 : vector<1x32xf32>
    %cst_24 = arith.constant 9.99999974E-6 : f32
    %55 = vector.broadcast %cst_24 : f32 to vector<1x32xf32>
    %56 = arith.addf %54, %55 : vector<1x32xf32>
    %57 = math.rsqrt %56 : vector<1x32xf32>
    %58 = arith.mulf %9, %57 : vector<1x32xf32>
    %59 = arith.mulf %45, %58 : vector<1x32xf32>
    %60 = arith.subf %10, %59 : vector<1x32xf32>
    %61 = vector.broadcast %58 : vector<1x32xf32> to vector<8x32xf32>
    %62 = arith.mulf %41, %61 : vector<8x32xf32>
    %63 = vector.broadcast %60 : vector<1x32xf32> to vector<8x32xf32>
    %64 = arith.addf %62, %63 : vector<8x32xf32>
    %65 = vector.extract_strided_slice %16 {offsets = [16, 0], sizes = [8, 32], strides = [1, 1]} : vector<32x32xf32> to vector<8x32xf32>
    %cst_25 = arith.constant dense<0.000000e+00> : vector<32xf32>
    %66 = vector.multi_reduction <add>, %65, %cst_25 [0] : vector<8x32xf32> to vector<32xf32>
    %67 = vector.shape_cast %66 : vector<32xf32> to vector<1x32xf32>
    %cst_26 = arith.constant 8.000000e+00 : f32
    %68 = vector.broadcast %cst_26 : f32 to vector<1x32xf32>
    %69 = arith.divf %67, %68 : vector<1x32xf32>
    %70 = arith.mulf %65, %65 : vector<8x32xf32>
    %cst_27 = arith.constant dense<0.000000e+00> : vector<32xf32>
    %71 = vector.multi_reduction <add>, %70, %cst_27 [0] : vector<8x32xf32> to vector<32xf32>
    %72 = vector.shape_cast %71 : vector<32xf32> to vector<1x32xf32>
    %cst_28 = arith.constant 8.000000e+00 : f32
    %73 = vector.broadcast %cst_28 : f32 to vector<1x32xf32>
    %74 = arith.divf %72, %73 : vector<1x32xf32>
    %75 = arith.mulf %69, %69 : vector<1x32xf32>
    %76 = arith.subf %74, %75 : vector<1x32xf32>
    %cst_29 = arith.constant 0.000000e+00 : f32
    %77 = vector.broadcast %cst_29 : f32 to vector<1x32xf32>
    %78 = arith.maximumf %76, %77 : vector<1x32xf32>
    %cst_30 = arith.constant 9.99999974E-6 : f32
    %79 = vector.broadcast %cst_30 : f32 to vector<1x32xf32>
    %80 = arith.addf %78, %79 : vector<1x32xf32>
    %81 = math.rsqrt %80 : vector<1x32xf32>
    %82 = arith.mulf %9, %81 : vector<1x32xf32>
    %83 = arith.mulf %69, %82 : vector<1x32xf32>
    %84 = arith.subf %10, %83 : vector<1x32xf32>
    %85 = vector.broadcast %82 : vector<1x32xf32> to vector<8x32xf32>
    %86 = arith.mulf %65, %85 : vector<8x32xf32>
    %87 = vector.broadcast %84 : vector<1x32xf32> to vector<8x32xf32>
    %88 = arith.addf %86, %87 : vector<8x32xf32>
    %89 = vector.extract_strided_slice %16 {offsets = [24, 0], sizes = [8, 32], strides = [1, 1]} : vector<32x32xf32> to vector<8x32xf32>
    %cst_31 = arith.constant dense<0.000000e+00> : vector<32xf32>
    %90 = vector.multi_reduction <add>, %89, %cst_31 [0] : vector<8x32xf32> to vector<32xf32>
    %91 = vector.shape_cast %90 : vector<32xf32> to vector<1x32xf32>
    %cst_32 = arith.constant 8.000000e+00 : f32
    %92 = vector.broadcast %cst_32 : f32 to vector<1x32xf32>
    %93 = arith.divf %91, %92 : vector<1x32xf32>
    %94 = arith.mulf %89, %89 : vector<8x32xf32>
    %cst_33 = arith.constant dense<0.000000e+00> : vector<32xf32>
    %95 = vector.multi_reduction <add>, %94, %cst_33 [0] : vector<8x32xf32> to vector<32xf32>
    %96 = vector.shape_cast %95 : vector<32xf32> to vector<1x32xf32>
    %cst_34 = arith.constant 8.000000e+00 : f32
    %97 = vector.broadcast %cst_34 : f32 to vector<1x32xf32>
    %98 = arith.divf %96, %97 : vector<1x32xf32>
    %99 = arith.mulf %93, %93 : vector<1x32xf32>
    %100 = arith.subf %98, %99 : vector<1x32xf32>
    %cst_35 = arith.constant 0.000000e+00 : f32
    %101 = vector.broadcast %cst_35 : f32 to vector<1x32xf32>
    %102 = arith.maximumf %100, %101 : vector<1x32xf32>
    %cst_36 = arith.constant 9.99999974E-6 : f32
    %103 = vector.broadcast %cst_36 : f32 to vector<1x32xf32>
    %104 = arith.addf %102, %103 : vector<1x32xf32>
    %105 = math.rsqrt %104 : vector<1x32xf32>
    %106 = arith.mulf %9, %105 : vector<1x32xf32>
    %107 = arith.mulf %93, %106 : vector<1x32xf32>
    %108 = arith.subf %10, %107 : vector<1x32xf32>
    %109 = vector.broadcast %106 : vector<1x32xf32> to vector<8x32xf32>
    %110 = arith.mulf %89, %109 : vector<8x32xf32>
    %111 = vector.broadcast %108 : vector<1x32xf32> to vector<8x32xf32>
    %112 = arith.addf %110, %111 : vector<8x32xf32>
    %113 = tpu.concatenate %40, %64, %88, %112 in 1 : vector<8x32xf32>, vector<8x32xf32>, vector<8x32xf32>, vector<8x32xf32> -> vector<8x128xf32>
    %c0_37 = arith.constant 0 : index
    %c0_38 = arith.constant 0 : index
    %114 = vector.load %arg6[%c0_37, %c0_38] : memref<8x128xf32, #tpu.memory_space<vmem>>, vector<8x128xf32>
    tpu.vector_store %arg6[%c0_37, %c0_38], %113 {strides = array<i32>} : memref<8x128xf32, #tpu.memory_space<vmem>>, vector<8x128xf32>,
    return
  }
}

</mosaic_0001>

<bundles_post_ra>
// kernel: tpu_custom_call.1
= control target key start
LH: loop header
LB: loop body
LE: loop exit
PB: predicated region body
PF: predicated region fallthrough
CT: control target
= control target key end

     0   :  { %vm69_vm0 = vcmask 1041408   ;;  %v448_v2 = vmov 0   ;;  %s616_s0 = inlined_call_operand.vmem [shape: s32[32,1], index: 0, kind: input, shape index: {}]   ;;  %s617_s1 = inlined_call_operand.vmem [shape: f32[10,64], index: 1, kind: input, shape index: {}]   ;;  %s618_s2 = inlined_call_operand.vmem [shape: f32[64,32], index: 2, kind: input, shape index: {}]   ;;  %s619_s3 = inlined_call_operand.vmem [shape: f32[1,32], index: 3, kind: input, shape index: {}]   ;;  %s620_s4 = inlined_call_operand.vmem [shape: f32[1,32], index: 4, kind: input, shape index: {}]   ;;  %s621_s5 = inlined_call_operand.vmem [shape: f32[1,32], index: 5, kind: input, shape index: {}]   ;;  %s622_s6 = inlined_call_operand.hbm [shape: f32[8,128], index: 6, kind: output, shape index: {}]  }
   0x1   :  { %v29_v0 = vld [vmem:[%s616_s0 + $0x18] sm:$0xff]  ;;  %v27_v1 = vld [vmem:[%s616_s0 + $0x8] sm:$0xff]  ;;  %410 = vset.pattern.permute.xlu1 %v448_v2  ;;  %409 = vset.pattern.permute.xlu0 %v448_v2 }
   0x2   :  { %v55_v3 = vld [vmem:[%s617_s1 + $0x8] sm:$0x3]  ;;  %40 = vperm.xlu1 %410, %v29_v0   ;;  %34 = vperm.xlu0 %409, %v27_v1  }
   0x3   :  { %11 = vsyncpa [#allocation3], 0  ;;  %384 = vmatpush.msk.msra.mxu3 %vm69_vm0, %v55_v3  ;;  %375 = vmatpush.msk.msra.mxu0 %vm69_vm0, %v55_v3  ;;  %v28_v4 = vld [vmem:[%s616_s0 + $0x10] sm:$0xff]  ;;  %v26_v5 = vld [vmem:[%s616_s0] sm:$0xff]  ;;  %v24_v11 = vlaneseq  ;;  %vm56_vm1 = vcmask 80896   ;;  %v449_v18 = vmov 0.0  }
   0x4   :  { %v54_v6 = vld [vmem:[%s617_s1] sm:$0xff]  ;;  %v112_v7 = vld [vmem:[%s618_s2 + $0x38] sm:$0xff]  ;;  %v111_v8 = vld [vmem:[%s618_s2 + $0x30] sm:$0xff]  ;;  %vm116_vm6 = vcmask 523264   ;;  %v450_v30 = vmov 8.0   ;;  %vm162_vm7 = vcmask 261120  }
   0x5   :  { %385 = vmatpush.msra.mxu3 %v54_v6  ;;  %88 = vmatpush.msra.mxu0 %v54_v6  ;;  %v110_v9 = vld [vmem:[%s618_s2 + $0x28] sm:$0xff]  ;;  %v109_v10 = vld [vmem:[%s618_s2 + $0x20] sm:$0xff]  ;;  %v108_v12 = vld [vmem:[%s618_s2 + $0x18] sm:$0xff]  ;;  %v25_v14 = vand.u32 127, %v24_v11  ;;  %412 = vrcp.f32 %v450_v30  ;;  %s453_s27 = smov 96   ;;  %s454_s28 = smov [#allocation2]  }
   0x6   :  { %386 = vmatpush.msra.mxu1 %v112_v7  ;;  %387 = vmatpush.msra.mxu2 %v112_v7  ;;  %v107_v13 = vld [vmem:[%s618_s2 + $0x10] sm:$0xff]  ;;  %v106_v15 = vld [vmem:[%s618_s2 + $0x8] sm:$0xff]  ;;  %v105_v25 = vld [vmem:[%s618_s2] sm:$0xff]  ;;  %s360_s29 = sshll.u32 %s454_s28, 4  ;;  %s362_s8 = sshll.u32 %s622_s6, 4  ;;  %s361_s29 = int_to_ptr.vmem [resolvable:$true] %s360_s29  ;;  %s363_s8 = int_to_ptr.hbm [resolvable:$true] %s362_s8 }
   0x7   :  { %137 = vmatpush.msrb.mxu0 %v112_v7  ;;  %v411_v32 = vld [vmem:[%s619_s3] ss:$0 sm:$0xff] }
   0x8   :  { %388 = vmatpush.msra.mxu1 %v111_v8  ;;  %389 = vmatpush.msra.mxu2 %v111_v8 }
   0x9   :  { %138 = vmatpush.msrb.mxu0 %v111_v8 }
   0xa   :  { %37 = vperm.xlu0 %409, %v28_v4   ;;  %31 = vperm.xlu1 %410, %v26_v5  }
   0xb   :  { %390 = vmatpush.msra.mxu1 %v110_v9  ;;  %139 = vmatpush.msrb.mxu0 %v110_v9  ;;  %v413_v31 = vpop.eup %412 }
   0xc   :  { %391 = vmatpush.msra.mxu2 %v110_v9  ;;  %v171_v33 = vmul.f32 8.0, %v413_v31  ;;  %vm175_vm8 = vweird.f32 %v413_v31 }
   0xd   :  { %392 = vmatpush.msra.mxu1 %v109_v10  ;;  %140 = vmatpush.msrb.mxu0 %v109_v10 }
   0xe   :  { %393 = vmatpush.msra.mxu2 %v109_v10  ;;  %v172_v39 = vsub.f32 1.0, %v171_v33 }
   0xf   :  { %394 = vmatpush.msra.mxu1 %v108_v12  ;;  %141 = vmatpush.msrb.mxu0 %v108_v12 }
  0x10   :  { %395 = vmatpush.msra.mxu2 %v108_v12  ;;  %v173_v46 = vmul.f32 %v413_v31, %v172_v39 }
  0x11   :  { %396 = vmatpush.msra.mxu1 %v107_v13  ;;  %142 = vmatpush.msrb.mxu0 %v107_v13 }
  0x12   :  { %397 = vmatpush.msra.mxu2 %v107_v13  ;;  %v174_v56 = vadd.f32 %v413_v31, %v173_v46 }
  0x13   :  { %398 = vmatpush.msra.mxu1 %v106_v15  ;;  %143 = vmatpush.msrb.mxu0 %v106_v15 }
  0x14   :  { %399 = vmatpush.msra.mxu2 %v106_v15  ;;  %v557_v2 = vsel %vm175_vm8, %v413_v31, %v174_v56 }
  0x15   :  { %400 = vmatpush.msra.mxu1 %v105_v25  ;;  %144 = vmatpush.msrb.mxu0 %v105_v25 }
  0x16   :  { %401 = vmatpush.msra.mxu2 %v105_v25 }
  0x74   :  { %v41_v16 = vpop.permute.xlu1 %40  ;;  %v35_v17 = vpop.permute.xlu0 %34 }
  0x75   :  { %vm43_vm2 = vcmp.eq.s32.totalorder %v35_v17, %v25_v14  ;;  %vm45_vm5 = vcmp.eq.s32.totalorder %v41_v16, %v25_v14 }
  0x76   :  { %v372_v19 = vsel %vm43_vm2, 1.0, %v449_v18  ;;  %v374_v24 = vsel %vm45_vm5, 1.0, %v449_v18  ;;  %vm352_vm5 = vcmask 785408  }
  0x77   :  { %377 = vmatmul.msk.f32.vlgmr.msra.gmra.mxu3 %vm56_vm1, %v372_v19 }
  0x7c   :  { %v38_v20 = vpop.permute.xlu0 %37  ;;  %v32_v21 = vpop.permute.xlu1 %31 }
  0x7d   :  { %vm44_vm3 = vcmp.eq.s32.totalorder %v38_v20, %v25_v14  ;;  %vm42_vm4 = vcmp.eq.s32.totalorder %v32_v21, %v25_v14 }
  0x7e   :  { %v373_v22 = vsel %vm44_vm3, 1.0, %v449_v18  ;;  %v371_v23 = vsel %vm42_vm4, 1.0, %v449_v18 }
  0x7f   :  { %376 = vmatmul.msk.f32.vlgmr.msra.gmra.mxu0 %vm56_vm1, %v371_v23  ;;  %378 = vmatmul.msk.f32.gmra.mxu3 %vm56_vm1, %v373_v22 }
  0x87   :  { %379 = vmatmul.msk.f32.gmra.mxu3 %vm56_vm1, %v374_v24 }
  0xfa   :  { %v93_v26 = vpop.f32.mrf.mxu3 }
  0xfb   :  { %381 = vmatmul.msk.f32.vlgmr.msra.gmra.mxu1 %vm116_vm6, %v93_v26 }
  0xfc   :  { %v90_v27 = vpop.f32.mrf.mxu0 }
  0xfd   :  { %380 = vmatmul.msk.f32.vlgmr.msrb.gmra.mxu0 %vm116_vm6, %v90_v27 }
 0x102   :  { %v96_v28 = vpop.f32.mrf.mxu3 }
 0x103   :  { %382 = vmatmul.msk.f32.vlgmr.msra.gmra.mxu2 %vm116_vm6, %v96_v28 }
 0x10a   :  { %v99_v29 = vpop.f32.mrf.mxu3 }
 0x10b   :  { %383 = vmatmul.msk.f32.gmra.mxu2 %vm116_vm6, %v99_v29 }
 0x178   :  { %v149_v34 = vpop.f32.mrf.mxu1 }
 0x179   :  { %v150_v35 = vadd.f32 %v411_v32, %v149_v34 }
 0x17a   :  { %v146_v36 = vpop.f32.mrf.mxu0 }
 0x17b   :  { %v543_v37 = vmax.f32 %v150_v35, 0.0  ;;  %v147_v38 = vadd.f32 %v411_v32, %v146_v36 }
 0x17d   :  { %v212_v40 = vsel %vm162_vm7, %v543_v37, 0.0  ;;  %v220_v41 = vmul.f32 %v543_v37, %v543_v37  ;;  %v549_v42 = vmax.f32 %v147_v38, 0.0 }
 0x17e   :  { %v213_v43 = vrot.slane %v212_v40, 4 }
 0x17f   :  { %v221_v44 = vsel %vm162_vm7, %v220_v41, 0.0  ;;  %v163_v45 = vsel %vm162_vm7, %v549_v42, 0.0  ;;  %v178_v47 = vmul.f32 %v549_v42, %v549_v42 }
 0x180   :  { %v214_v48 = vadd.f32 %v213_v43, %v212_v40  ;;  %v222_v49 = vrot.slane %v221_v44, 4  ;;  %v164_v50 = vrot.slane %v163_v45, 4 }
 0x181   :  { %v179_v51 = vsel %vm162_vm7, %v178_v47, 0.0 }
 0x182   :  { %v215_v52 = vrot.slane %v214_v48, 2  ;;  %v223_v53 = vadd.f32 %v222_v49, %v221_v44  ;;  %v165_v54 = vadd.f32 %v164_v50, %v163_v45  ;;  %v180_v55 = vrot.slane %v179_v51, 4 }
 0x184   :  { %v216_v57 = vadd.f32 %v215_v52, %v214_v48  ;;  %v224_v58 = vrot.slane %v223_v53, 2  ;;  %v166_v59 = vrot.slane %v165_v54, 2  ;;  %v181_v60 = vadd.f32 %v180_v55, %v179_v51 }
 0x186   :  { %v217_v61 = vrot.slane %v216_v57, 1  ;;  %v225_v62 = vadd.f32 %v224_v58, %v223_v53  ;;  %v167_v63 = vadd.f32 %v166_v59, %v165_v54  ;;  %v182_v0 = vrot.slane %v181_v60, 2  ;;  %v152_v1 = vpop.f32.mrf.mxu2 }
 0x187   :  { %v153_v3 = vadd.f32 %v411_v32, %v152_v1 }
 0x188   :  { %v226_v4 = vrot.slane %v225_v62, 1  ;;  %v168_v5 = vrot.slane %v167_v63, 1  ;;  %v183_v6 = vadd.f32 %v182_v0, %v181_v60  ;;  %v218_v7 = vadd.f32 %v217_v61, %v216_v57 }
 0x189   :  { %v559_v8 = vmax.f32 %v153_v3, 0.0 }
 0x18a   :  { %v227_v9 = vadd.f32 %v226_v4, %v225_v62  ;;  %v169_v10 = vadd.f32 %v168_v5, %v167_v63  ;;  %v184_v11 = vrot.slane %v183_v6, 1  ;;  %v562_v12 = vmul.f32 %v218_v7, %v557_v2 }
 0x18b   :  { %v254_v13 = vsel %vm162_vm7, %v559_v8, 0.0  ;;  %v262_v14 = vmul.f32 %v559_v8, %v559_v8 }
 0x18c   :  { %v569_v15 = vmul.f32 %v557_v2, %v169_v10  ;;  %v185_v16 = vadd.f32 %v184_v11, %v183_v6  ;;  %v255_v17 = vrot.slane %v254_v13, 4  ;;  %v228_v18 = vmul.f32 %v227_v9, %v557_v2 }
 0x18d   :  { %v263_v19 = vsel %vm162_vm7, %v262_v14, 0.0  ;;  %v229_v20 = vmul.f32 %v562_v12, %v562_v12 }
 0x18e   :  { %v186_v21 = vmul.f32 %v185_v16, %v557_v2  ;;  %v187_v22 = vmul.f32 %v569_v15, %v569_v15  ;;  %v256_v23 = vadd.f32 %v255_v17, %v254_v13  ;;  %v264_v24 = vrot.slane %v263_v19, 4  ;;  %v155_v25 = vpop.f32.mrf.mxu2 }
 0x18f   :  { %v156_v26 = vadd.f32 %v411_v32, %v155_v25  ;;  %v230_v27 = vsub.f32 %v228_v18, %v229_v20 }
 0x190   :  { %v188_v28 = vsub.f32 %v186_v21, %v187_v22  ;;  %v257_v29 = vrot.slane %v256_v23, 2  ;;  %v265_v30 = vadd.f32 %v264_v24, %v263_v19  ;;  %v103_v19 = vld [vmem:[%s620_s4] sm:$0x1]  ;;  %s451_s4 = smov 32  }
 0x191   :  { %v578_v31 = vmax.f32 %v156_v26, 0.0  ;;  %v231_v33 = vmax.f32 %v230_v27, 0.0 }
 0x192   :  { %v189_v34 = vmax.f32 %v188_v28, 0.0  ;;  %v258_v35 = vadd.f32 %v257_v29, %v256_v23  ;;  %v266_v36 = vrot.slane %v265_v30, 2  ;;  %v104_v28 = vld [vmem:[%s621_s5] sm:$0x1]  ;;  %s452_s5 = smov 64  }
 0x193   :  { %v296_v38 = vsel %vm162_vm7, %v578_v31, 0.0  ;;  %v304_v39 = vmul.f32 %v578_v31, %v578_v31  ;;  %v232_v40 = vadd.f32 1e-05, %v231_v33 }
 0x194   :  { %v190_v41 = vadd.f32 1e-05, %v189_v34  ;;  %v259_v43 = vrot.slane %v258_v35, 1  ;;  %v267_v32 = vadd.f32 %v266_v36, %v265_v30  ;;  %v297_v44 = vrot.slane %v296_v38, 4 }
 0x195   :  { %v305_v45 = vsel %vm162_vm7, %v304_v39, 0.0  ;;  %414 = vrsqrt.f32 %v232_v40  ;;  %vm239_vm11 = vweird.f32 %v232_v40 }
 0x196   :  { %416 = vrsqrt.f32 %v190_v41  ;;  %v260_v46 = vadd.f32 %v259_v43, %v258_v35  ;;  %v268_v47 = vrot.slane %v267_v32, 1  ;;  %v298_v48 = vadd.f32 %v297_v44, %v296_v38 }
 0x197   :  { %v306_v49 = vrot.slane %v305_v45, 4  ;;  %vm197_vm12 = vweird.f32 %v190_v41 }
 0x198   :  { %v586_v50 = vmul.f32 %v260_v46, %v557_v2  ;;  %v269_v51 = vadd.f32 %v268_v47, %v267_v32  ;;  %v299_v52 = vrot.slane %v298_v48, 2 }
 0x199   :  { %v307_v53 = vadd.f32 %v306_v49, %v305_v45 }
 0x19a   :  { %v270_v54 = vmul.f32 %v269_v51, %v557_v2  ;;  %v271_v55 = vmul.f32 %v586_v50, %v586_v50  ;;  %v300_v57 = vadd.f32 %v299_v52, %v298_v48 }
 0x19b   :  { %v415_v56 = vpop.eup %414  ;;  %v308_v58 = vrot.slane %v307_v53, 2 }
 0x19c   :  { %v417_v59 = vpop.eup %416  ;;  %v272_v60 = vsub.f32 %v270_v54, %v271_v55  ;;  %v234_v61 = vmul.f32 %v415_v56, %v232_v40  ;;  %v301_v63 = vrot.slane %v300_v57, 1  ;;  %vm240_vm9 = vweird.f32 %v415_v56 }
 0x19d   :  { %v192_v62 = vmul.f32 %v417_v59, %v190_v41  ;;  %v309_v0 = vadd.f32 %v308_v58, %v307_v53  ;;  %vm198_vm10 = vweird.f32 %v417_v59  ;;  %vm241_vm13 = vmor %vm239_vm11, %vm240_vm9 }
 0x19e   :  { %v273_v1 = vmax.f32 %v272_v60, 0.0  ;;  %v235_v3 = vmul.f32 %v415_v56, %v234_v61  ;;  %v302_v5 = vadd.f32 %v301_v63, %v300_v57  ;;  %vm199_vm14 = vmor %vm197_vm12, %vm198_vm10 }
 0x19f   :  { %v193_v4 = vmul.f32 %v417_v59, %v192_v62  ;;  %v310_v6 = vrot.slane %v309_v0, 1 }
 0x1a0   :  { %v274_v7 = vadd.f32 1e-05, %v273_v1  ;;  %v236_v9 = vmul.f32 0.5, %v235_v3  ;;  %v592_v11 = vmul.f32 %v302_v5, %v557_v2 }
 0x1a1   :  { %v194_v10 = vmul.f32 0.5, %v193_v4  ;;  %v311_v13 = vadd.f32 %v310_v6, %v309_v0 }
 0x1a2   :  { %418 = vrsqrt.f32 %v274_v7  ;;  %v237_v14 = vsub.f32 1.5, %v236_v9  ;;  %v313_v18 = vmul.f32 %v592_v11, %v592_v11  ;;  %vm281_vm0 = vweird.f32 %v274_v7 }
 0x1a3   :  { %v195_v16 = vsub.f32 1.5, %v194_v10  ;;  %v312_v17 = vmul.f32 %v311_v13, %v557_v2 }
 0x1a4   :  { %v238_v20 = vmul.f32 %v415_v56, %v237_v14 }
 0x1a5   :  { %v196_v21 = vmul.f32 %v417_v59, %v195_v16  ;;  %v314_v22 = vsub.f32 %v312_v17, %v313_v18 }
 0x1a6   :  { %v242_v23 = vsel %vm241_vm13, %v415_v56, %v238_v20 }
 0x1a7   :  { %v200_v24 = vsel %vm199_vm14, %v417_v59, %v196_v21  ;;  %v315_v25 = vmax.f32 %v314_v22, 0.0  ;;  %v243_v26 = vmul.f32 %v242_v23, %v103_v19 }
 0x1a8   :  { %v419_v27 = vpop.eup %418  ;;  %v201_v2 = vmul.f32 %v200_v24, %v103_v19 }
 0x1a9   :  { %v276_v29 = vmul.f32 %v419_v27, %v274_v7  ;;  %v316_v30 = vadd.f32 1e-05, %v315_v25  ;;  %v244_v33 = vmul.f32 %v243_v26, %v562_v12  ;;  %v247_v35 = vperm.slane %v243_v26, 0 }
 0x1aa   :  { %v205_v34 = vperm.slane %v201_v2, 0  ;;  %v202_v36 = vmul.f32 %v201_v2, %v569_v15  ;;  %vm282_vm15 = vweird.f32 %v419_v27 }
 0x1ab   :  { %v277_v38 = vmul.f32 %v419_v27, %v276_v29  ;;  %420 = vrsqrt.f32 %v316_v30  ;;  %v245_v39 = vsub.f32 %v104_v28, %v244_v33  ;;  %v249_v32 = vmul.f32 %v247_v35, %v543_v37  ;;  %vm283_vm1 = vmor %vm281_vm0, %vm282_vm15 }
 0x1ac   :  { %v207_v40 = vmul.f32 %v205_v34, %v549_v42  ;;  %v203_v41 = vsub.f32 %v104_v28, %v202_v36  ;;  %vm323_vm3 = vweird.f32 %v316_v30 }
 0x1ad   :  { %v278_v43 = vmul.f32 0.5, %v277_v38  ;;  %v251_v44 = vperm.slane %v245_v39, 0 }
 0x1ae   :  { %v209_v45 = vperm.slane %v203_v41, 0 }
 0x1af   :  { %v279_v46 = vsub.f32 1.5, %v278_v43  ;;  %v253_v47 = vadd.f32 %v251_v44, %v249_v32 }
 0x1b0   :  { %v211_v48 = vadd.f32 %v209_v45, %v207_v40 }
 0x1b1   :  { %v421_v12 = vpop.eup %420  ;;  %v280_v49 = vmul.f32 %v419_v27, %v279_v46  ;;  %339 = vrot.lane.b32.xlu2 %v253_v47, %s451_s4 }
 0x1b2   :  { %v318_v15 = vmul.f32 %v421_v12, %v316_v30  ;;  %vm324_vm2 = vweird.f32 %v421_v12 }
 0x1b3   :  { %v284_v51 = vsel %vm283_vm1, %v419_v27, %v280_v49  ;;  %vm325_vm4 = vmor %vm323_vm3, %vm324_vm2 }
 0x1b4   :  { %v285_v52 = vmul.f32 %v284_v51, %v103_v19  ;;  %v319_v42 = vmul.f32 %v421_v12, %v318_v15 }
 0x1b6   :  { %v289_v53 = vperm.slane %v285_v52, 0  ;;  %v320_v54 = vmul.f32 0.5, %v319_v42  ;;  %v286_v37 = vmul.f32 %v285_v52, %v586_v50 }
 0x1b8   :  { %v321_v55 = vsub.f32 1.5, %v320_v54  ;;  %v287_v56 = vsub.f32 %v104_v28, %v286_v37  ;;  %v291_v57 = vmul.f32 %v289_v53, %v559_v8 }
 0x1ba   :  { %v322_v58 = vmul.f32 %v421_v12, %v321_v55  ;;  %v293_v59 = vperm.slane %v287_v56, 0 }
 0x1bc   :  { %v326_v60 = vsel %vm325_vm4, %v421_v12, %v322_v58  ;;  %v295_v61 = vadd.f32 %v293_v59, %v291_v57 }
 0x1bd   :  { %v327_v62 = vmul.f32 %v326_v60, %v103_v19 }
 0x1be   :  { %343 = vrot.lane.b32.xlu2 %v295_v61, %s452_s5 }
 0x1bf   :  { %v331_v63 = vperm.slane %v327_v62, 0  ;;  %v328_v0 = vmul.f32 %v327_v62, %v592_v11 }
 0x1c1   :  { %v329_v1 = vsub.f32 %v104_v28, %v328_v0  ;;  %v333_v50 = vmul.f32 %v331_v63, %v578_v31 }
 0x1c3   :  { %v335_v3 = vperm.slane %v329_v1, 0 }
 0x1c5   :  { %v337_v4 = vadd.f32 %v335_v3, %v333_v50 }
 0x1c7   :  { %347 = vrot.lane.b32.xlu0 %v337_v4, %s453_s27 }
 0x20b   :  { %v340_v8 = vpop.permute.xlu2 %339 }
 0x20c   :  { %v350_v6 = vsel %vm162_vm7, %v211_v48, %v340_v8 }
 0x218   :  { %v344_v5 = vpop.permute.xlu2 %343 }
 0x219   :  { %v351_v7 = vsel %vm116_vm6, %v350_v6, %v344_v5 }
 0x239   :  { %v348_v9 = vpop.permute.xlu0 %347 }
 0x23a   :  { %v353_v31 = vsel %vm352_vm5, %v351_v7, %v348_v9 }
 0x23b   :  { %354 = vst [vmem:[#allocation2] sm:$0xff] %v353_v31 }
 0x23c   :  { %365 = dma.vmem_to_hbm [thread:$0]  %s361_s29, 128, %s363_s8, [#allocation3]  }
 0x23d   :  { %446 = dma.done.wait [#allocation3], 128  }
 0x23e   :  { %447 = vsyncadd [#allocation3], 4294967168 }
 0x23f   :  { %370 = vsyncpa [#allocation3], 1 }

</bundles_post_ra>
